<compile_context>
chip_gen: v6e
topology: v6e:2x2x1
jax: 0.10.0
libtpu: 0.0.40
codegen_flags: <defaults>
</compile_context>

<pallas_src>
import functools

import jax
import jax.numpy as jnp
from jax.experimental import pallas as pl
from jax.experimental.pallas import tpu as pltpu


def _interp_matrix(in_size: int) -> jnp.ndarray:
    """Dense (2*in_size, in_size) bilinear (align_corners=False) matrix.

    Matches PyTorch nn.Upsample(scale_factor=2, mode='bilinear',
    align_corners=False): src = max(0, (dst + 0.5) / 2 - 0.5);
    i0 = floor(src); i1 = min(i0 + 1, in_size - 1); w1 = src - i0.
    """
    out_size = 2 * in_size
    i = jnp.arange(out_size, dtype=jnp.float32)
    src = jnp.maximum((i + 0.5) / 2.0 - 0.5, 0.0)
    i0 = jnp.floor(src).astype(jnp.int32)
    frac = src - i0.astype(jnp.float32)
    i1 = jnp.minimum(i0 + 1, in_size - 1)
    rows = jnp.arange(out_size)
    u = jnp.zeros((out_size, in_size), dtype=jnp.float32)
    u = u.at[rows, i0].add(1.0 - frac)
    u = u.at[rows, i1].add(frac)
    return u


@functools.lru_cache(maxsize=None)
def _upsample_matrix_bf16(h: int, w: int) -> jnp.ndarray:
    """Cached kron(uh, uw)^T of shape (H*W, 2H*2W), stored in bf16.

    For scale-2, align_corners=False the interpolation fractions are only
    {0, 0.25, 0.75, 1.0}; their pairwise products are exactly representable
    in bf16, so the bf16 demotion is lossless.
    """
    uh = _interp_matrix(h)                    # (2H, H)
    uw = _interp_matrix(w)                    # (2W, W)
    ut = jnp.kron(uh, uw).T                   # (H*W, 2H*2W)
    return jnp.asarray(ut, dtype=jnp.bfloat16)


def _upsample_conv_kernel(wbd_ref, ut_ref, x_ref, o_ref):
    # wbd_ref: (N*Cout, N*Cin)  f32  block-diagonal 1x1-conv weight kron(I_N, W)
    # ut_ref : (H*W, 2H*2W)     bf16 combined separable-upsample matrix
    # x_ref  : (N*Cin, H*W)     f32  channel-major input (free NCHW reshape)
    # o_ref  : (N*Cout, 2H*2W)  f32  sublane- and lane-dense output slab
    # 1x1 conv first (commutes exactly with the linear upsample).
    y = jnp.dot(wbd_ref[...], x_ref[...], preferred_element_type=jnp.float32)
    # Widen the lossless-bf16 constant to f32; keep activations in f32.
    ut = ut_ref[...].astype(jnp.float32)
    # Combined H+W bilinear upsample as one MXU matmul, straight into NCHW.
    o_ref[...] = jnp.dot(y, ut, preferred_element_type=jnp.float32)


@jax.jit
def upsample_forward(x_nchw: jnp.ndarray, conv_w: jnp.ndarray) -> jnp.ndarray:
    """UpSample.forward: NCHW in, NCHW out. conv_w: (Cout, Cin, 1, 1), no bias."""
    N, Cin, H, W = x_nchw.shape
    Cout = conv_w.shape[0]
    HW = H * W
    OHW = 4 * H * W  # = (2H) * (2W)

    # Free reshapes only — no HBM transposes.
    x_flat = x_nchw.reshape(N * Cin, HW).astype(jnp.float32)
    w_mat = conv_w.reshape(Cout, Cin).astype(jnp.float32)
    # Block-diagonal weight folds the batch into the matmul M dimension.
    w_bd = jnp.kron(jnp.eye(N, dtype=jnp.float32), w_mat)   # (N*Cout, N*Cin)

    ut_bf16 = _upsample_matrix_bf16(H, W)                    # (HW, OHW) bf16

    out_flat = pl.pallas_call(
        _upsample_conv_kernel,
        out_shape=jax.ShapeDtypeStruct((N * Cout, OHW), jnp.float32),
        in_specs=[
            pl.BlockSpec(memory_space=pltpu.MemorySpace.VMEM),
            pl.BlockSpec(memory_space=pltpu.MemorySpace.VMEM),
            pl.BlockSpec(memory_space=pltpu.MemorySpace.VMEM),
        ],
        out_specs=pl.BlockSpec(memory_space=pltpu.MemorySpace.VMEM),
    )(w_bd, ut_bf16, x_flat)

    return out_flat.reshape(N, Cout, 2 * H, 2 * W)


def _reference_forward(x_nchw, conv_w):
    """Pure-JAX reference in the ORIGINAL order (upsample, then 1x1 conv)."""
    Cout = conv_w.shape[0]
    _, _, H, W = x_nchw.shape
    uh = _interp_matrix(H)
    uw = _interp_matrix(W)
    up = jnp.einsum("ph,nchw->ncpw", uh, x_nchw.astype(jnp.float32))
    up = jnp.einsum("qw,ncpw->ncpq", uw, up)
    w_mat = conv_w.reshape(Cout, -1).astype(jnp.float32)
    return jnp.einsum("oc,ncpq->nopq", w_mat, up)


if __name__ == "__main__":
    # Module config: in_channels=4, add_channels=4 => conv maps 8 -> 4 channels.
    in_channels, add_channels = 4, 4
    Cin = in_channels + add_channels
    Cout = in_channels
    N, H, W = 2, 16, 16

    key = jax.random.PRNGKey(0)
    kx, kw = jax.random.split(key)
    x = jax.random.normal(kx, (N, Cin, H, W), dtype=jnp.float32)
    # Deterministic synthetic init for Conv2d weight (Cout, Cin, 1, 1), no bias.
    conv_w = jax.random.normal(kw, (Cout, Cin, 1, 1), dtype=jnp.float32) * 0.1

    out = upsample_forward(x, conv_w)
    out = jax.block_until_ready(out)

    ref = _reference_forward(x, conv_w)
    assert out.shape == (N, Cout, 2 * H, 2 * W), out.shape
    assert jnp.allclose(out, ref, atol=1e-4, rtol=1e-4), "mismatch vs reference"

    print("KERNEL_OK")
</pallas_src>

<mosaic_0001>
module attributes {stable_mosaic.version = 11 : i64} {
  func.func private @main(%arg0: i32) attributes {dimension_semantics = [#tpu.dimension_semantics<core_parallel>], iteration_bounds = array<i64: 2>, tpu.core_type = #tpu.core_type<sc_scalar_subcore>, window_params = []} {
    return
  }
}

module attributes {stable_mosaic.version = 11 : i64} {
  func.func private @main(%arg0: i32) attributes {dimension_semantics = [#tpu.dimension_semantics<core_parallel>], iteration_bounds = array<i64: 2>, tpu.core_type = #tpu.core_type<sc_scalar_subcore>, window_params = []} {
    return
  }
}

module attributes {stable_mosaic.version = 11 : i64} {
  func.func @_upsample_conv_kernel(%arg0: memref<8x16xf32, #tpu.memory_space<vmem>>, %arg1: memref<256x1024xbf16, #tpu.memory_space<vmem>>, %arg2: memref<16x256xf32, #tpu.memory_space<vmem>>, %arg3: memref<8x1024xf32, #tpu.memory_space<vmem>>) attributes {dimension_semantics = [], scalar_prefetch = 0 : i64, scratch_operands = 0 : i64, tpu.core_type = #tpu.core_type<tc>} {
    %c0 = arith.constant 0 : index
    %c0_0 = arith.constant 0 : index
    %0 = vector.load %arg0[%c0, %c0_0] : memref<8x16xf32, #tpu.memory_space<vmem>>, vector<8x16xf32>
    %c0_1 = arith.constant 0 : index
    %c0_2 = arith.constant 0 : index
    %1 = vector.load %arg2[%c0_1, %c0_2] : memref<16x256xf32, #tpu.memory_space<vmem>>, vector<16x256xf32>
    %cst = arith.constant dense<0.000000e+00> : vector<8x256xf32>
    %2 = tpu.matmul %0, %1, %cst {dimension_numbers = #tpu.dot_dimension_numbers<[1], [0], [0], [1], [0, 0, 1, 1], [], []>} : vector<8x16xf32>, vector<16x256xf32>, vector<8x256xf32> -> vector<8x256xf32>
    %c0_3 = arith.constant 0 : index
    %c0_4 = arith.constant 0 : index
    %3 = vector.load %arg1[%c0_3, %c0_4] : memref<256x1024xbf16, #tpu.memory_space<vmem>>, vector<256x1024xbf16>
    %4 = arith.extf %3 : vector<256x1024xbf16> to vector<256x1024xf32>
    %cst_5 = arith.constant dense<0.000000e+00> : vector<8x1024xf32>
    %5 = tpu.matmul %2, %4, %cst_5 {dimension_numbers = #tpu.dot_dimension_numbers<[1], [0], [0], [1], [0, 0, 1, 1], [], []>} : vector<8x256xf32>, vector<256x1024xf32>, vector<8x1024xf32> -> vector<8x1024xf32>
    %c0_6 = arith.constant 0 : index
    %c0_7 = arith.constant 0 : index
    %6 = vector.load %arg3[%c0_6, %c0_7] : memref<8x1024xf32, #tpu.memory_space<vmem>>, vector<8x1024xf32>
    tpu.vector_store %arg3[%c0_6, %c0_7], %5 {strides = array<i32>} : memref<8x1024xf32, #tpu.memory_space<vmem>>, vector<8x1024xf32>,
    return
  }
}

</mosaic_0001>

<bundles_post_ra>
// kernel: upsample_forward.1
= control target key start
LH: loop header
LB: loop body
LE: loop exit
PB: predicated region body
PF: predicated region fallthrough
CT: control target
= control target key end

     0   :  { %v776_v3 = vmov 0.0   ;;  %vm19_vm0 = vcmask 130048   ;;  %s1227_s2 = inlined_call_operand.vmem [shape: f32[16,256], index: 2, kind: input, shape index: {}]   ;;  %s1228_s0 = inlined_call_operand.vmem [shape: f32[8,16], index: 0, kind: input, shape index: {}]   ;;  %s1229_s1 = inlined_call_operand.vmem [shape: bf16[256,1024], index: 1, kind: input, shape index: {}]   ;;  %s1230_s3 = inlined_call_operand.vmem [shape: f32[8,1024], index: 3, kind: output, shape index: {}]  }
   0x1   :  { %v18_v0 = vld [vmem:[%s1227_s2 + $0x18] sm:$0xff]  ;;  %v17_v1 = vld [vmem:[%s1227_s2 + $0x10] sm:$0xff]  ;;  %v16_v2 = vld [vmem:[%s1227_s2 + $0x8] sm:$0xff]  ;;  %87 = vmatprep.mubr.f32.mxu0 %v776_v3 }
   0x2   :  { %51 = vmatprep.subr.mxu0 %v18_v0  ;;  %v15_v4 = vld [vmem:[%s1227_s2] sm:$0xff]  ;;  %v155_v8 = vld [vmem:[%s1229_s1 + $0x1e8] sm:$0xff] }
   0x3   :  { %v14_v5 = vld [vmem:[%s1228_s0] sm:$0xff]  ;;  %52 = vmatpush1.msra.mxu0 %v17_v1  ;;  %v151_v11 = vld [vmem:[%s1229_s1 + $0x1c8] sm:$0xff]  ;;  %v344_v12 = vunpack.c.l.bf16 %v155_v8  ;;  %v345_v13 = vunpack.c.h.bf16 %v155_v8 }
   0x4   :  { %v154_v6 = vld [vmem:[%s1229_s1 + $0x1e0] sm:$0xff]  ;;  %53 = vmatprep.subr.mxu0 %v16_v2  ;;  %v147_v16 = vld [vmem:[%s1229_s1 + $0x1a8] sm:$0xff]  ;;  %v336_v17 = vunpack.c.l.bf16 %v151_v11  ;;  %v337_v18 = vunpack.c.h.bf16 %v151_v11 }
   0x5   :  { %v343_v7 = vunpack.c.h.bf16 %v154_v6  ;;  %v342_v9 = vunpack.c.l.bf16 %v154_v6  ;;  %v150_v10 = vld [vmem:[%s1229_s1 + $0x1c0] sm:$0xff]  ;;  %54 = vmatpush1.msra.mxu0 %v15_v4  ;;  %v143_v21 = vld [vmem:[%s1229_s1 + $0x188] sm:$0xff]  ;;  %v329_v23 = vunpack.c.h.bf16 %v147_v16  ;;  %v328_v24 = vunpack.c.l.bf16 %v147_v16 }
   0x6   :  { %v335_v14 = vunpack.c.h.bf16 %v150_v10  ;;  %v146_v15 = vld [vmem:[%s1229_s1 + $0x1a0] sm:$0xff]  ;;  %v334_v19 = vunpack.c.l.bf16 %v150_v10  ;;  %774 = vmatmul.mubr.msk.f32.vlgmr.msra.gmra.mxu0 %vm19_vm0, %v14_v5  ;;  %549 = vmatprep.subr.mxu0 %v345_v13  ;;  %v139_v27 = vld [vmem:[%s1229_s1 + $0x168] sm:$0xff]  ;;  %v321_v29 = vunpack.c.h.bf16 %v143_v21  ;;  %v320_v30 = vunpack.c.l.bf16 %v143_v21 }
   0x7   :  { %478 = vmatprep.subr.mxu1 %v343_v7  ;;  %v142_v20 = vld [vmem:[%s1229_s1 + $0x180] sm:$0xff]  ;;  %v327_v22 = vunpack.c.h.bf16 %v146_v15  ;;  %550 = vmatpush1.msra.mxu0 %v344_v12  ;;  %v326_v25 = vunpack.c.l.bf16 %v146_v15  ;;  %v135_v33 = vld [vmem:[%s1229_s1 + $0x148] sm:$0xff]  ;;  %v313_v35 = vunpack.c.h.bf16 %v139_v27  ;;  %v312_v36 = vunpack.c.l.bf16 %v139_v27 }
   0x8   :  { %479 = vmatpush1.msra.mxu1 %v342_v9  ;;  %v138_v26 = vld [vmem:[%s1229_s1 + $0x160] sm:$0xff]  ;;  %551 = vmatprep.subr.mxu0 %v337_v18  ;;  %v319_v28 = vunpack.c.h.bf16 %v142_v20  ;;  %v318_v31 = vunpack.c.l.bf16 %v142_v20  ;;  %v131_v39 = vld [vmem:[%s1229_s1 + $0x128] sm:$0xff]  ;;  %v305_v41 = vunpack.c.h.bf16 %v135_v33  ;;  %v304_v42 = vunpack.c.l.bf16 %v135_v33 }
   0x9   :  { %480 = vmatprep.subr.mxu1 %v335_v14  ;;  %552 = vmatpush1.msra.mxu0 %v336_v17  ;;  %v134_v32 = vld [vmem:[%s1229_s1 + $0x140] sm:$0xff]  ;;  %v311_v34 = vunpack.c.h.bf16 %v138_v26  ;;  %v310_v37 = vunpack.c.l.bf16 %v138_v26  ;;  %v127_v45 = vld [vmem:[%s1229_s1 + $0x108] sm:$0xff]  ;;  %v297_v47 = vunpack.c.h.bf16 %v131_v39  ;;  %v296_v48 = vunpack.c.l.bf16 %v131_v39 }
   0xa   :  { %481 = vmatpush1.msra.mxu1 %v334_v19  ;;  %553 = vmatprep.subr.mxu0 %v329_v23  ;;  %v130_v38 = vld [vmem:[%s1229_s1 + $0x120] sm:$0xff]  ;;  %v303_v40 = vunpack.c.h.bf16 %v134_v32  ;;  %v302_v43 = vunpack.c.l.bf16 %v134_v32  ;;  %v123_v51 = vld [vmem:[%s1229_s1 + $0xe8] sm:$0xff]  ;;  %v289_v53 = vunpack.c.h.bf16 %v127_v45  ;;  %v288_v54 = vunpack.c.l.bf16 %v127_v45 }
   0xb   :  { %482 = vmatprep.subr.mxu1 %v327_v22  ;;  %554 = vmatpush1.msra.mxu0 %v328_v24  ;;  %v126_v44 = vld [vmem:[%s1229_s1 + $0x100] sm:$0xff]  ;;  %v295_v46 = vunpack.c.h.bf16 %v130_v38  ;;  %v294_v49 = vunpack.c.l.bf16 %v130_v38  ;;  %v119_v57 = vld [vmem:[%s1229_s1 + $0xc8] sm:$0xff]  ;;  %v281_v59 = vunpack.c.h.bf16 %v123_v51  ;;  %v280_v60 = vunpack.c.l.bf16 %v123_v51 }
   0xc   :  { %483 = vmatpush1.msra.mxu1 %v326_v25  ;;  %555 = vmatprep.subr.mxu0 %v321_v29  ;;  %v122_v50 = vld [vmem:[%s1229_s1 + $0xe0] sm:$0xff]  ;;  %v287_v52 = vunpack.c.h.bf16 %v126_v44  ;;  %v286_v55 = vunpack.c.l.bf16 %v126_v44  ;;  %v115_v63 = vld [vmem:[%s1229_s1 + $0xa8] sm:$0xff]  ;;  %v273_v1 = vunpack.c.h.bf16 %v119_v57  ;;  %v272_v2 = vunpack.c.l.bf16 %v119_v57 }
   0xd   :  { %484 = vmatprep.subr.mxu1 %v319_v28  ;;  %556 = vmatpush1.msra.mxu0 %v320_v30  ;;  %v118_v56 = vld [vmem:[%s1229_s1 + $0xc0] sm:$0xff]  ;;  %v279_v58 = vunpack.c.h.bf16 %v122_v50  ;;  %v278_v61 = vunpack.c.l.bf16 %v122_v50  ;;  %v111_v5 = vld [vmem:[%s1229_s1 + $0x88] sm:$0xff]  ;;  %v265_v7 = vunpack.c.h.bf16 %v115_v63  ;;  %v264_v8 = vunpack.c.l.bf16 %v115_v63 }
   0xe   :  { %485 = vmatpush1.msra.mxu1 %v318_v31  ;;  %557 = vmatprep.subr.mxu0 %v313_v35  ;;  %v114_v62 = vld [vmem:[%s1229_s1 + $0xa0] sm:$0xff]  ;;  %v271_v0 = vunpack.c.h.bf16 %v118_v56  ;;  %v270_v3 = vunpack.c.l.bf16 %v118_v56  ;;  %v107_v11 = vld [vmem:[%s1229_s1 + $0x68] sm:$0xff]  ;;  %v257_v13 = vunpack.c.h.bf16 %v111_v5  ;;  %v256_v14 = vunpack.c.l.bf16 %v111_v5 }
   0xf   :  { %486 = vmatprep.subr.mxu1 %v311_v34  ;;  %558 = vmatpush1.msra.mxu0 %v312_v36  ;;  %v110_v4 = vld [vmem:[%s1229_s1 + $0x80] sm:$0xff]  ;;  %v263_v6 = vunpack.c.h.bf16 %v114_v62  ;;  %v262_v9 = vunpack.c.l.bf16 %v114_v62  ;;  %v103_v17 = vld [vmem:[%s1229_s1 + $0x48] sm:$0xff]  ;;  %v249_v19 = vunpack.c.h.bf16 %v107_v11  ;;  %v248_v20 = vunpack.c.l.bf16 %v107_v11 }
  0x10   :  { %487 = vmatpush1.msra.mxu1 %v310_v37  ;;  %559 = vmatprep.subr.mxu0 %v305_v41  ;;  %v106_v10 = vld [vmem:[%s1229_s1 + $0x60] sm:$0xff]  ;;  %v255_v12 = vunpack.c.h.bf16 %v110_v4  ;;  %v254_v15 = vunpack.c.l.bf16 %v110_v4  ;;  %v99_v23 = vld [vmem:[%s1229_s1 + $0x28] sm:$0xff]  ;;  %v241_v25 = vunpack.c.h.bf16 %v103_v17  ;;  %v240_v26 = vunpack.c.l.bf16 %v103_v17 }
  0x11   :  { %488 = vmatprep.subr.mxu1 %v303_v40  ;;  %560 = vmatpush1.msra.mxu0 %v304_v42  ;;  %v102_v16 = vld [vmem:[%s1229_s1 + $0x40] sm:$0xff]  ;;  %v247_v18 = vunpack.c.h.bf16 %v106_v10  ;;  %v246_v21 = vunpack.c.l.bf16 %v106_v10  ;;  %v95_v29 = vld [vmem:[%s1229_s1 + $0x8] sm:$0xff]  ;;  %v233_v31 = vunpack.c.h.bf16 %v99_v23  ;;  %v232_v32 = vunpack.c.l.bf16 %v99_v23 }
  0x12   :  { %489 = vmatpush1.msra.mxu1 %v302_v43  ;;  %561 = vmatprep.subr.mxu0 %v297_v47  ;;  %v98_v22 = vld [vmem:[%s1229_s1 + $0x20] sm:$0xff]  ;;  %v239_v24 = vunpack.c.h.bf16 %v102_v16  ;;  %v238_v27 = vunpack.c.l.bf16 %v102_v16  ;;  %v219_v35 = vld [vmem:[%s1229_s1 + $0x3e8] sm:$0xff]  ;;  %v225_v37 = vunpack.c.h.bf16 %v95_v29  ;;  %v224_v38 = vunpack.c.l.bf16 %v95_v29 }
  0x13   :  { %490 = vmatprep.subr.mxu1 %v295_v46  ;;  %562 = vmatpush1.msra.mxu0 %v296_v48  ;;  %v94_v28 = vld [vmem:[%s1229_s1] sm:$0xff]  ;;  %v231_v30 = vunpack.c.h.bf16 %v98_v22  ;;  %v230_v33 = vunpack.c.l.bf16 %v98_v22  ;;  %v215_v41 = vld [vmem:[%s1229_s1 + $0x3c8] sm:$0xff]  ;;  %v473_v43 = vunpack.c.h.bf16 %v219_v35  ;;  %v472_v44 = vunpack.c.l.bf16 %v219_v35 }
  0x14   :  { %491 = vmatpush1.msra.mxu1 %v294_v49  ;;  %563 = vmatprep.subr.mxu0 %v289_v53  ;;  %v218_v34 = vld [vmem:[%s1229_s1 + $0x3e0] sm:$0xff]  ;;  %v223_v36 = vunpack.c.h.bf16 %v94_v28  ;;  %v222_v39 = vunpack.c.l.bf16 %v94_v28  ;;  %v211_v47 = vld [vmem:[%s1229_s1 + $0x3a8] sm:$0xff]  ;;  %v465_v49 = vunpack.c.h.bf16 %v215_v41  ;;  %v464_v50 = vunpack.c.l.bf16 %v215_v41 }
  0x15   :  { %492 = vmatprep.subr.mxu1 %v287_v52  ;;  %564 = vmatpush1.msra.mxu0 %v288_v54  ;;  %v214_v40 = vld [vmem:[%s1229_s1 + $0x3c0] sm:$0xff]  ;;  %v471_v42 = vunpack.c.h.bf16 %v218_v34  ;;  %v470_v45 = vunpack.c.l.bf16 %v218_v34  ;;  %v207_v53 = vld [vmem:[%s1229_s1 + $0x388] sm:$0xff]  ;;  %v456_v56 = vunpack.c.l.bf16 %v211_v47 }
  0x16   :  { %493 = vmatpush1.msra.mxu1 %v286_v55  ;;  %565 = vmatprep.subr.mxu0 %v281_v59  ;;  %v210_v46 = vld [vmem:[%s1229_s1 + $0x3a0] sm:$0xff]  ;;  %v463_v48 = vunpack.c.h.bf16 %v214_v40  ;;  %v462_v51 = vunpack.c.l.bf16 %v214_v40  ;;  %v457_v55 = vunpack.c.h.bf16 %v211_v47  ;;  %v203_v59 = vld [vmem:[%s1229_s1 + $0x368] sm:$0xff]  ;;  %v448_v62 = vunpack.c.l.bf16 %v207_v53 }
  0x17   :  { %494 = vmatprep.subr.mxu1 %v279_v58  ;;  %566 = vmatpush1.msra.mxu0 %v280_v60  ;;  %v206_v52 = vld [vmem:[%s1229_s1 + $0x380] sm:$0xff]  ;;  %v455_v54 = vunpack.c.h.bf16 %v210_v46  ;;  %v454_v57 = vunpack.c.l.bf16 %v210_v46  ;;  %v440_v4 = vunpack.c.l.bf16 %v203_v59 }
  0x18   :  { %495 = vmatpush1.msra.mxu1 %v278_v61  ;;  %567 = vmatprep.subr.mxu0 %v273_v1  ;;  %v202_v58 = vld [vmem:[%s1229_s1 + $0x360] sm:$0xff]  ;;  %v447_v60 = vunpack.c.h.bf16 %v206_v52  ;;  %v449_v61 = vunpack.c.h.bf16 %v207_v53  ;;  %v446_v63 = vunpack.c.l.bf16 %v206_v52  ;;  %v199_v1 = vld [vmem:[%s1229_s1 + $0x348] sm:$0xff] }
  0x19   :  { %496 = vmatprep.subr.mxu1 %v271_v0  ;;  %568 = vmatpush1.msra.mxu0 %v272_v2  ;;  %v198_v0 = vld [vmem:[%s1229_s1 + $0x340] sm:$0xff]  ;;  %v439_v2 = vunpack.c.h.bf16 %v202_v58  ;;  %v438_v5 = vunpack.c.l.bf16 %v202_v58  ;;  %v432_v10 = vunpack.c.l.bf16 %v199_v1 }
  0x1a   :  { %497 = vmatpush1.msra.mxu1 %v270_v3  ;;  %569 = vmatprep.subr.mxu0 %v265_v7  ;;  %v441_v3 = vunpack.c.h.bf16 %v203_v59  ;;  %v195_v7 = vld [vmem:[%s1229_s1 + $0x328] sm:$0xff]  ;;  %v430_v11 = vunpack.c.l.bf16 %v198_v0 }
  0x1b   :  { %498 = vmatprep.subr.mxu1 %v263_v6  ;;  %570 = vmatpush1.msra.mxu0 %v264_v8  ;;  %v194_v6 = vld [vmem:[%s1229_s1 + $0x320] sm:$0xff]  ;;  %v431_v8 = vunpack.c.h.bf16 %v198_v0  ;;  %v424_v16 = vunpack.c.l.bf16 %v195_v7 }
  0x1c   :  { %499 = vmatpush1.msra.mxu1 %v262_v9  ;;  %571 = vmatprep.subr.mxu0 %v257_v13  ;;  %v433_v9 = vunpack.c.h.bf16 %v199_v1  ;;  %v191_v13 = vld [vmem:[%s1229_s1 + $0x308] sm:$0xff]  ;;  %v422_v17 = vunpack.c.l.bf16 %v194_v6  ;;  %v158_v0 = vld [vmem:[%s1229_s1 + $0x200] sm:$0xff] }
  0x1d   :  { %500 = vmatprep.subr.mxu1 %v255_v12  ;;  %572 = vmatpush1.msra.mxu0 %v256_v14  ;;  %v190_v12 = vld [vmem:[%s1229_s1 + $0x300] sm:$0xff]  ;;  %v423_v14 = vunpack.c.h.bf16 %v194_v6  ;;  %v416_v22 = vunpack.c.l.bf16 %v191_v13  ;;  %v159_v1 = vld [vmem:[%s1229_s1 + $0x208] sm:$0xff]  ;;  %v156_v6 = vld [vmem:[%s1229_s1 + $0x1f0] sm:$0xff] }
  0x1e   :  { %501 = vmatpush1.msra.mxu1 %v254_v15  ;;  %573 = vmatprep.subr.mxu0 %v249_v19  ;;  %v425_v15 = vunpack.c.h.bf16 %v195_v7  ;;  %v187_v19 = vld [vmem:[%s1229_s1 + $0x2e8] sm:$0xff]  ;;  %v414_v23 = vunpack.c.l.bf16 %v190_v12  ;;  %v157_v7 = vld [vmem:[%s1229_s1 + $0x1f8] sm:$0xff] }
  0x1f   :  { %502 = vmatprep.subr.mxu1 %v247_v18  ;;  %574 = vmatpush1.msra.mxu0 %v248_v20  ;;  %v186_v18 = vld [vmem:[%s1229_s1 + $0x2e0] sm:$0xff]  ;;  %v415_v20 = vunpack.c.h.bf16 %v190_v12  ;;  %v408_v28 = vunpack.c.l.bf16 %v187_v19  ;;  %v153_v12 = vld [vmem:[%s1229_s1 + $0x1d8] sm:$0xff] }
  0x20   :  { %503 = vmatpush1.msra.mxu1 %v246_v21  ;;  %575 = vmatprep.subr.mxu0 %v241_v25  ;;  %v417_v21 = vunpack.c.h.bf16 %v191_v13  ;;  %v183_v25 = vld [vmem:[%s1229_s1 + $0x2c8] sm:$0xff]  ;;  %v406_v29 = vunpack.c.l.bf16 %v186_v18  ;;  %v346_v13 = vunpack.c.l.bf16 %v156_v6 }
  0x21   :  { %504 = vmatprep.subr.mxu1 %v239_v24  ;;  %576 = vmatpush1.msra.mxu0 %v240_v26  ;;  %v182_v24 = vld [vmem:[%s1229_s1 + $0x2c0] sm:$0xff]  ;;  %v407_v26 = vunpack.c.h.bf16 %v186_v18  ;;  %v400_v34 = vunpack.c.l.bf16 %v183_v25  ;;  %v149_v18 = vld [vmem:[%s1229_s1 + $0x1b8] sm:$0xff] }
  0x22   :  { %505 = vmatpush1.msra.mxu1 %v238_v27  ;;  %577 = vmatprep.subr.mxu0 %v233_v31  ;;  %v409_v27 = vunpack.c.h.bf16 %v187_v19  ;;  %v179_v31 = vld [vmem:[%s1229_s1 + $0x2a8] sm:$0xff]  ;;  %v398_v35 = vunpack.c.l.bf16 %v182_v24  ;;  %v341_v19 = vunpack.c.h.bf16 %v153_v12 }
  0x23   :  { %506 = vmatprep.subr.mxu1 %v231_v30  ;;  %578 = vmatpush1.msra.mxu0 %v232_v32  ;;  %v178_v30 = vld [vmem:[%s1229_s1 + $0x2a0] sm:$0xff]  ;;  %v399_v32 = vunpack.c.h.bf16 %v182_v24  ;;  %v392_v40 = vunpack.c.l.bf16 %v179_v31 }
  0x24   :  { %507 = vmatpush1.msra.mxu1 %v230_v33  ;;  %579 = vmatprep.subr.mxu0 %v225_v37  ;;  %v401_v33 = vunpack.c.h.bf16 %v183_v25  ;;  %v175_v37 = vld [vmem:[%s1229_s1 + $0x288] sm:$0xff]  ;;  %v390_v41 = vunpack.c.l.bf16 %v178_v30  ;;  %v333_v25 = vunpack.c.h.bf16 %v149_v18 }
  0x25   :  { %508 = vmatprep.subr.mxu1 %v223_v36  ;;  %580 = vmatpush1.msra.mxu0 %v224_v38  ;;  %v174_v36 = vld [vmem:[%s1229_s1 + $0x280] sm:$0xff]  ;;  %v391_v38 = vunpack.c.h.bf16 %v178_v30  ;;  %v384_v46 = vunpack.c.l.bf16 %v175_v37 }
  0x26   :  { %509 = vmatpush1.msra.mxu1 %v222_v39  ;;  %581 = vmatprep.subr.mxu0 %v473_v43  ;;  %v393_v39 = vunpack.c.h.bf16 %v179_v31  ;;  %v171_v43 = vld [vmem:[%s1229_s1 + $0x268] sm:$0xff]  ;;  %v382_v47 = vunpack.c.l.bf16 %v174_v36 }
  0x27   :  { %510 = vmatprep.subr.mxu1 %v471_v42  ;;  %582 = vmatpush2.msra.mxu0 %v472_v44  ;;  %v170_v42 = vld [vmem:[%s1229_s1 + $0x260] sm:$0xff]  ;;  %v383_v44 = vunpack.c.h.bf16 %v174_v36  ;;  %v376_v52 = vunpack.c.l.bf16 %v171_v43 }
  0x28   :  { %511 = vmatpush2.msra.mxu1 %v470_v45  ;;  %583 = vmatprep.subr.mxu0 %v465_v49  ;;  %v385_v45 = vunpack.c.h.bf16 %v175_v37  ;;  %v167_v49 = vld [vmem:[%s1229_s1 + $0x248] sm:$0xff]  ;;  %v374_v53 = vunpack.c.l.bf16 %v170_v42 }
  0x29   :  { %512 = vmatprep.subr.mxu1 %v463_v48  ;;  %584 = vmatpush2.msra.mxu0 %v464_v50  ;;  %v166_v48 = vld [vmem:[%s1229_s1 + $0x240] sm:$0xff]  ;;  %v375_v50 = vunpack.c.h.bf16 %v170_v42  ;;  %v368_v58 = vunpack.c.l.bf16 %v167_v49 }
  0x2a   :  { %513 = vmatpush2.msra.mxu1 %v462_v51  ;;  %585 = vmatprep.subr.mxu0 %v457_v55  ;;  %v377_v51 = vunpack.c.h.bf16 %v171_v43  ;;  %v163_v55 = vld [vmem:[%s1229_s1 + $0x228] sm:$0xff]  ;;  %v366_v59 = vunpack.c.l.bf16 %v166_v48 }
  0x2b   :  { %514 = vmatprep.subr.mxu1 %v455_v54  ;;  %586 = vmatpush2.msra.mxu0 %v456_v56  ;;  %v162_v54 = vld [vmem:[%s1229_s1 + $0x220] sm:$0xff]  ;;  %v367_v56 = vunpack.c.h.bf16 %v166_v48 }
  0x2c   :  { %515 = vmatpush2.msra.mxu1 %v454_v57  ;;  %587 = vmatprep.subr.mxu0 %v449_v61  ;;  %v369_v57 = vunpack.c.h.bf16 %v167_v49  ;;  %v361_v61 = vunpack.c.h.bf16 %v163_v55 }
  0x2d   :  { %516 = vmatprep.subr.mxu1 %v447_v60  ;;  %588 = vmatpush2.msra.mxu0 %v448_v62  ;;  %v359_v60 = vunpack.c.h.bf16 %v162_v54  ;;  %v360_v62 = vunpack.c.l.bf16 %v163_v55 }
  0x2e   :  { %517 = vmatpush2.msra.mxu1 %v446_v63  ;;  %589 = vmatprep.subr.mxu0 %v441_v3  ;;  %v358_v63 = vunpack.c.l.bf16 %v162_v54  ;;  %v353_v3 = vunpack.c.h.bf16 %v159_v1 }
  0x2f   :  { %518 = vmatprep.subr.mxu1 %v439_v2  ;;  %590 = vmatpush2.msra.mxu0 %v440_v4  ;;  %v351_v2 = vunpack.c.h.bf16 %v158_v0  ;;  %v352_v4 = vunpack.c.l.bf16 %v159_v1  ;;  %v117_v1 = vld [vmem:[%s1229_s1 + $0xb8] sm:$0xff] }
  0x30   :  { %519 = vmatpush2.msra.mxu1 %v438_v5  ;;  %591 = vmatprep.subr.mxu0 %v433_v9  ;;  %v350_v5 = vunpack.c.l.bf16 %v158_v0  ;;  %v349_v9 = vunpack.c.h.bf16 %v157_v7  ;;  %v116_v0 = vld [vmem:[%s1229_s1 + $0xb0] sm:$0xff] }
  0x31   :  { %520 = vmatprep.subr.mxu1 %v431_v8  ;;  %592 = vmatpush2.msra.mxu0 %v432_v10  ;;  %v347_v8 = vunpack.c.h.bf16 %v156_v6  ;;  %v152_v10 = vld [vmem:[%s1229_s1 + $0x1d0] sm:$0xff] }
  0x32   :  { %521 = vmatpush2.msra.mxu1 %v430_v11  ;;  %593 = vmatprep.subr.mxu0 %v425_v15  ;;  %v112_v6 = vld [vmem:[%s1229_s1 + $0x90] sm:$0xff] }
  0x33   :  { %522 = vmatprep.subr.mxu1 %v423_v14  ;;  %594 = vmatpush2.msra.mxu0 %v424_v16  ;;  %v348_v14 = vunpack.c.l.bf16 %v157_v7  ;;  %v339_v16 = vunpack.c.h.bf16 %v152_v10  ;;  %v113_v7 = vld [vmem:[%s1229_s1 + $0x98] sm:$0xff] }
  0x34   :  { %523 = vmatpush2.msra.mxu1 %v422_v17  ;;  %595 = vmatprep.subr.mxu0 %v417_v21  ;;  %v148_v17 = vld [vmem:[%s1229_s1 + $0x1b0] sm:$0xff]  ;;  %v340_v21 = vunpack.c.l.bf16 %v153_v12  ;;  %v268_v12 = vunpack.c.l.bf16 %v117_v1 }
  0x35   :  { %524 = vmatprep.subr.mxu1 %v415_v20  ;;  %596 = vmatpush2.msra.mxu0 %v416_v22  ;;  %v338_v20 = vunpack.c.l.bf16 %v152_v10  ;;  %v144_v22 = vld [vmem:[%s1229_s1 + $0x190] sm:$0xff]  ;;  %v331_v24 = vunpack.c.h.bf16 %v148_v17  ;;  %v266_v10 = vunpack.c.l.bf16 %v116_v0 }
  0x36   :  { %525 = vmatpush2.msra.mxu1 %v414_v23  ;;  %597 = vmatprep.subr.mxu0 %v409_v27  ;;  %v145_v23 = vld [vmem:[%s1229_s1 + $0x198] sm:$0xff]  ;;  %v332_v27 = vunpack.c.l.bf16 %v149_v18  ;;  %v323_v30 = vunpack.c.h.bf16 %v144_v22  ;;  %v260_v18 = vunpack.c.l.bf16 %v113_v7 }
  0x37   :  { %526 = vmatprep.subr.mxu1 %v407_v26  ;;  %598 = vmatpush2.msra.mxu0 %v408_v28  ;;  %v330_v26 = vunpack.c.l.bf16 %v148_v17  ;;  %v140_v28 = vld [vmem:[%s1229_s1 + $0x170] sm:$0xff]  ;;  %v325_v31 = vunpack.c.h.bf16 %v145_v23  ;;  %v258_v17 = vunpack.c.l.bf16 %v112_v6 }
  0x38   :  { %527 = vmatpush2.msra.mxu1 %v406_v29  ;;  %599 = vmatprep.subr.mxu0 %v401_v33  ;;  %v141_v29 = vld [vmem:[%s1229_s1 + $0x178] sm:$0xff]  ;;  %v324_v33 = vunpack.c.l.bf16 %v145_v23  ;;  %v315_v36 = vunpack.c.h.bf16 %v140_v28 }
  0x39   :  { %528 = vmatprep.subr.mxu1 %v399_v32  ;;  %600 = vmatpush2.msra.mxu0 %v400_v34  ;;  %v322_v32 = vunpack.c.l.bf16 %v144_v22  ;;  %v136_v34 = vld [vmem:[%s1229_s1 + $0x150] sm:$0xff]  ;;  %v317_v37 = vunpack.c.h.bf16 %v141_v29 }
  0x3a   :  { %529 = vmatpush2.msra.mxu1 %v398_v35  ;;  %601 = vmatprep.subr.mxu0 %v393_v39  ;;  %v137_v35 = vld [vmem:[%s1229_s1 + $0x158] sm:$0xff]  ;;  %v316_v39 = vunpack.c.l.bf16 %v141_v29  ;;  %v307_v42 = vunpack.c.h.bf16 %v136_v34 }
  0x3b   :  { %530 = vmatprep.subr.mxu1 %v391_v38  ;;  %602 = vmatpush2.msra.mxu0 %v392_v40  ;;  %v314_v38 = vunpack.c.l.bf16 %v140_v28  ;;  %v132_v40 = vld [vmem:[%s1229_s1 + $0x130] sm:$0xff]  ;;  %v309_v43 = vunpack.c.h.bf16 %v137_v35 }
  0x3c   :  { %531 = vmatpush2.msra.mxu1 %v390_v41  ;;  %603 = vmatprep.subr.mxu0 %v385_v45  ;;  %v133_v41 = vld [vmem:[%s1229_s1 + $0x138] sm:$0xff]  ;;  %v308_v45 = vunpack.c.l.bf16 %v137_v35  ;;  %v299_v48 = vunpack.c.h.bf16 %v132_v40 }
  0x3d   :  { %532 = vmatprep.subr.mxu1 %v383_v44  ;;  %604 = vmatpush2.msra.mxu0 %v384_v46  ;;  %v306_v44 = vunpack.c.l.bf16 %v136_v34  ;;  %v128_v46 = vld [vmem:[%s1229_s1 + $0x110] sm:$0xff]  ;;  %v301_v49 = vunpack.c.h.bf16 %v133_v41 }
  0x3e   :  { %533 = vmatpush2.msra.mxu1 %v382_v47  ;;  %605 = vmatprep.subr.mxu0 %v377_v51  ;;  %v129_v47 = vld [vmem:[%s1229_s1 + $0x118] sm:$0xff]  ;;  %v300_v51 = vunpack.c.l.bf16 %v133_v41  ;;  %v291_v54 = vunpack.c.h.bf16 %v128_v46 }
  0x3f   :  { %534 = vmatprep.subr.mxu1 %v375_v50  ;;  %606 = vmatpush2.msra.mxu0 %v376_v52  ;;  %v298_v50 = vunpack.c.l.bf16 %v132_v40  ;;  %v124_v52 = vld [vmem:[%s1229_s1 + $0xf0] sm:$0xff]  ;;  %v293_v55 = vunpack.c.h.bf16 %v129_v47 }
  0x40   :  { %535 = vmatpush2.msra.mxu1 %v374_v53  ;;  %607 = vmatprep.subr.mxu0 %v369_v57  ;;  %v125_v53 = vld [vmem:[%s1229_s1 + $0xf8] sm:$0xff]  ;;  %v292_v57 = vunpack.c.l.bf16 %v129_v47 }
  0x41   :  { %536 = vmatprep.subr.mxu1 %v367_v56  ;;  %608 = vmatpush2.msra.mxu0 %v368_v58  ;;  %v290_v56 = vunpack.c.l.bf16 %v128_v46  ;;  %v120_v58 = vld [vmem:[%s1229_s1 + $0xd0] sm:$0xff] }
  0x42   :  { %537 = vmatpush2.msra.mxu1 %v366_v59  ;;  %609 = vmatprep.subr.mxu0 %v361_v61  ;;  %v121_v59 = vld [vmem:[%s1229_s1 + $0xd8] sm:$0xff]  ;;  %v285_v61 = vunpack.c.h.bf16 %v125_v53 }
  0x43   :  { %538 = vmatprep.subr.mxu1 %v359_v60  ;;  %610 = vmatpush2.msra.mxu0 %v360_v62  ;;  %v283_v60 = vunpack.c.h.bf16 %v124_v52  ;;  %v282_v62 = vunpack.c.l.bf16 %v124_v52 }
  0x44   :  { %539 = vmatpush2.msra.mxu1 %v358_v63  ;;  %611 = vmatprep.subr.mxu0 %v353_v3  ;;  %v284_v63 = vunpack.c.l.bf16 %v125_v53  ;;  %v277_v3 = vunpack.c.h.bf16 %v121_v59 }
  0x45   :  { %540 = vmatprep.subr.mxu1 %v351_v2  ;;  %612 = vmatpush2.msra.mxu0 %v352_v4  ;;  %v275_v2 = vunpack.c.h.bf16 %v120_v58  ;;  %v274_v4 = vunpack.c.l.bf16 %v120_v58 }
  0x46   :  { %541 = vmatpush2.msra.mxu1 %v350_v5  ;;  %691 = vmatprep.subr.mxu0 %v349_v9  ;;  %v276_v5 = vunpack.c.l.bf16 %v121_v59  ;;  %v269_v9 = vunpack.c.h.bf16 %v117_v1 }
  0x47   :  { %620 = vmatprep.subr.mxu1 %v347_v8  ;;  %v267_v8 = vunpack.c.h.bf16 %v116_v0 }
  0xc6   :  { %v1014_v11 = vpop.f32.mrf.mxu0 }
  0xc8   :  { %v91_v15 = vpop.f32.mrf.mxu0 }
  0xc9   :  { %542 = vmatprep.mubr.f32.mxu1 %v91_v15  ;;  %613 = vmatprep.mubr.f32.mxu0 %v91_v15 }
  0xca   :  { %543 = vmatmul.mubr.f32.vlgmr.msra.gmra.mxu1 %v1014_v11  ;;  %614 = vmatmul.mubr.f32.vlgmr.msra.gmra.mxu0 %v1014_v11 }
  0xcb   :  { %621 = vmatpush1.msra.mxu1 %v346_v13  ;;  %692 = vmatpush1.msra.mxu0 %v348_v14  ;;  %v108_v13 = vld [vmem:[%s1229_s1 + $0x70] sm:$0xff]  ;;  %v109_v14 = vld [vmem:[%s1229_s1 + $0x78] sm:$0xff] }
  0xcc   :  { %622 = vmatprep.subr.mxu1 %v339_v16  ;;  %684 = vmatprep.mubr.f32.mxu1 %v91_v15  ;;  %v261_v16 = vunpack.c.h.bf16 %v113_v7  ;;  %v253_v22 = vunpack.c.h.bf16 %v109_v14  ;;  %v250_v23 = vunpack.c.l.bf16 %v108_v13 }
  0xcd   :  { %693 = vmatprep.subr.mxu0 %v341_v19  ;;  %755 = vmatprep.mubr.f32.mxu0 %v91_v15  ;;  %v259_v15 = vunpack.c.h.bf16 %v112_v6  ;;  %v104_v19 = vld [vmem:[%s1229_s1 + $0x50] sm:$0xff] }
  0xce   :  { %623 = vmatpush1.msra.mxu1 %v338_v20  ;;  %694 = vmatpush1.msra.mxu0 %v340_v21  ;;  %v105_v20 = vld [vmem:[%s1229_s1 + $0x58] sm:$0xff]  ;;  %v251_v21 = vunpack.c.h.bf16 %v108_v13  ;;  %v242_v29 = vunpack.c.l.bf16 %v104_v19 }
  0xcf   :  { %624 = vmatprep.subr.mxu1 %v331_v24  ;;  %695 = vmatprep.subr.mxu0 %v333_v25  ;;  %v252_v24 = vunpack.c.l.bf16 %v109_v14  ;;  %v100_v25 = vld [vmem:[%s1229_s1 + $0x30] sm:$0xff]  ;;  %v245_v28 = vunpack.c.h.bf16 %v105_v20 }
  0xd0   :  { %625 = vmatpush1.msra.mxu1 %v330_v26  ;;  %696 = vmatpush1.msra.mxu0 %v332_v27  ;;  %v101_v26 = vld [vmem:[%s1229_s1 + $0x38] sm:$0xff]  ;;  %v243_v27 = vunpack.c.h.bf16 %v104_v19  ;;  %v234_v35 = vunpack.c.l.bf16 %v100_v25 }
  0xd1   :  { %626 = vmatprep.subr.mxu1 %v323_v30  ;;  %697 = vmatprep.subr.mxu0 %v325_v31  ;;  %v244_v30 = vunpack.c.l.bf16 %v105_v20  ;;  %v96_v31 = vld [vmem:[%s1229_s1 + $0x10] sm:$0xff]  ;;  %v237_v34 = vunpack.c.h.bf16 %v101_v26 }
  0xd2   :  { %627 = vmatpush1.msra.mxu1 %v322_v32  ;;  %698 = vmatpush1.msra.mxu0 %v324_v33  ;;  %v97_v32 = vld [vmem:[%s1229_s1 + $0x18] sm:$0xff]  ;;  %v235_v33 = vunpack.c.h.bf16 %v100_v25  ;;  %v226_v41 = vunpack.c.l.bf16 %v96_v31 }
  0xd3   :  { %628 = vmatprep.subr.mxu1 %v315_v36  ;;  %699 = vmatprep.subr.mxu0 %v317_v37  ;;  %v236_v36 = vunpack.c.l.bf16 %v101_v26  ;;  %v220_v37 = vld [vmem:[%s1229_s1 + $0x3f0] sm:$0xff]  ;;  %v229_v40 = vunpack.c.h.bf16 %v97_v32 }
  0xd4   :  { %629 = vmatpush1.msra.mxu1 %v314_v38  ;;  %700 = vmatpush1.msra.mxu0 %v316_v39  ;;  %v221_v38 = vld [vmem:[%s1229_s1 + $0x3f8] sm:$0xff]  ;;  %v227_v39 = vunpack.c.h.bf16 %v96_v31  ;;  %v474_v47 = vunpack.c.l.bf16 %v220_v37 }
  0xd5   :  { %630 = vmatprep.subr.mxu1 %v307_v42  ;;  %701 = vmatprep.subr.mxu0 %v309_v43  ;;  %v228_v42 = vunpack.c.l.bf16 %v97_v32  ;;  %v216_v43 = vld [vmem:[%s1229_s1 + $0x3d0] sm:$0xff]  ;;  %v477_v46 = vunpack.c.h.bf16 %v221_v38 }
  0xd6   :  { %631 = vmatpush1.msra.mxu1 %v306_v44  ;;  %702 = vmatpush1.msra.mxu0 %v308_v45  ;;  %v217_v44 = vld [vmem:[%s1229_s1 + $0x3d8] sm:$0xff]  ;;  %v475_v45 = vunpack.c.h.bf16 %v220_v37  ;;  %v466_v53 = vunpack.c.l.bf16 %v216_v43 }
  0xd7   :  { %632 = vmatprep.subr.mxu1 %v299_v48  ;;  %703 = vmatprep.subr.mxu0 %v301_v49  ;;  %v476_v48 = vunpack.c.l.bf16 %v221_v38  ;;  %v212_v49 = vld [vmem:[%s1229_s1 + $0x3b0] sm:$0xff]  ;;  %v469_v52 = vunpack.c.h.bf16 %v217_v44 }
  0xd8   :  { %633 = vmatpush1.msra.mxu1 %v298_v50  ;;  %704 = vmatpush1.msra.mxu0 %v300_v51  ;;  %v213_v50 = vld [vmem:[%s1229_s1 + $0x3b8] sm:$0xff]  ;;  %v467_v51 = vunpack.c.h.bf16 %v216_v43  ;;  %v458_v59 = vunpack.c.l.bf16 %v212_v49 }
  0xd9   :  { %634 = vmatprep.subr.mxu1 %v291_v54  ;;  %705 = vmatprep.subr.mxu0 %v293_v55  ;;  %v468_v54 = vunpack.c.l.bf16 %v217_v44  ;;  %v208_v55 = vld [vmem:[%s1229_s1 + $0x390] sm:$0xff]  ;;  %v461_v58 = vunpack.c.h.bf16 %v213_v50 }
  0xda   :  { %635 = vmatpush1.msra.mxu1 %v290_v56  ;;  %706 = vmatpush1.msra.mxu0 %v292_v57  ;;  %v209_v56 = vld [vmem:[%s1229_s1 + $0x398] sm:$0xff]  ;;  %v459_v57 = vunpack.c.h.bf16 %v212_v49  ;;  %v450_v1 = vunpack.c.l.bf16 %v208_v55 }
  0xdb   :  { %636 = vmatprep.subr.mxu1 %v283_v60  ;;  %707 = vmatprep.subr.mxu0 %v285_v61  ;;  %v460_v60 = vunpack.c.l.bf16 %v213_v50  ;;  %v204_v61 = vld [vmem:[%s1229_s1 + $0x370] sm:$0xff]  ;;  %v453_v0 = vunpack.c.h.bf16 %v209_v56 }
  0xdc   :  { %637 = vmatpush1.msra.mxu1 %v282_v62  ;;  %708 = vmatpush1.msra.mxu0 %v284_v63  ;;  %v205_v62 = vld [vmem:[%s1229_s1 + $0x378] sm:$0xff]  ;;  %v451_v63 = vunpack.c.h.bf16 %v208_v55  ;;  %v442_v7 = vunpack.c.l.bf16 %v204_v61 }
  0xdd   :  { %638 = vmatprep.subr.mxu1 %v275_v2  ;;  %709 = vmatprep.subr.mxu0 %v277_v3  ;;  %v452_v2 = vunpack.c.l.bf16 %v209_v56  ;;  %v200_v3 = vld [vmem:[%s1229_s1 + $0x350] sm:$0xff]  ;;  %v445_v6 = vunpack.c.h.bf16 %v205_v62 }
  0xde   :  { %639 = vmatpush1.msra.mxu1 %v274_v4  ;;  %710 = vmatpush1.msra.mxu0 %v276_v5  ;;  %v201_v4 = vld [vmem:[%s1229_s1 + $0x358] sm:$0xff]  ;;  %v443_v5 = vunpack.c.h.bf16 %v204_v61  ;;  %v434_v14 = vunpack.c.l.bf16 %v200_v3 }
  0xdf   :  { %640 = vmatprep.subr.mxu1 %v267_v8  ;;  %711 = vmatprep.subr.mxu0 %v269_v9  ;;  %v444_v8 = vunpack.c.l.bf16 %v205_v62  ;;  %v196_v9 = vld [vmem:[%s1229_s1 + $0x330] sm:$0xff]  ;;  %v437_v13 = vunpack.c.h.bf16 %v201_v4 }
  0xe0   :  { %641 = vmatpush1.msra.mxu1 %v266_v10  ;;  %712 = vmatpush1.msra.mxu0 %v268_v12  ;;  %v197_v10 = vld [vmem:[%s1229_s1 + $0x338] sm:$0xff]  ;;  %v435_v12 = vunpack.c.h.bf16 %v200_v3  ;;  %v426_v20 = vunpack.c.l.bf16 %v196_v9 }
  0xe1   :  { %642 = vmatprep.subr.mxu1 %v259_v15  ;;  %713 = vmatprep.subr.mxu0 %v261_v16  ;;  %v436_v15 = vunpack.c.l.bf16 %v201_v4  ;;  %v192_v16 = vld [vmem:[%s1229_s1 + $0x310] sm:$0xff]  ;;  %v429_v19 = vunpack.c.h.bf16 %v197_v10 }
  0xe2   :  { %643 = vmatpush1.msra.mxu1 %v258_v17  ;;  %714 = vmatpush1.msra.mxu0 %v260_v18  ;;  %v193_v17 = vld [vmem:[%s1229_s1 + $0x318] sm:$0xff]  ;;  %v427_v18 = vunpack.c.h.bf16 %v196_v9  ;;  %v418_v26 = vunpack.c.l.bf16 %v192_v16 }
  0xe3   :  { %644 = vmatprep.subr.mxu1 %v251_v21  ;;  %715 = vmatprep.subr.mxu0 %v253_v22  ;;  %v428_v21 = vunpack.c.l.bf16 %v197_v10  ;;  %v188_v22 = vld [vmem:[%s1229_s1 + $0x2f0] sm:$0xff]  ;;  %v421_v25 = vunpack.c.h.bf16 %v193_v17 }
  0xe4   :  { %645 = vmatpush1.msra.mxu1 %v250_v23  ;;  %716 = vmatpush1.msra.mxu0 %v252_v24  ;;  %v189_v23 = vld [vmem:[%s1229_s1 + $0x2f8] sm:$0xff]  ;;  %v419_v24 = vunpack.c.h.bf16 %v192_v16  ;;  %v410_v32 = vunpack.c.l.bf16 %v188_v22 }
  0xe5   :  { %646 = vmatprep.subr.mxu1 %v243_v27  ;;  %717 = vmatprep.subr.mxu0 %v245_v28  ;;  %v420_v27 = vunpack.c.l.bf16 %v193_v17  ;;  %v184_v28 = vld [vmem:[%s1229_s1 + $0x2d0] sm:$0xff]  ;;  %v413_v31 = vunpack.c.h.bf16 %v189_v23 }
  0xe6   :  { %647 = vmatpush1.msra.mxu1 %v242_v29  ;;  %718 = vmatpush1.msra.mxu0 %v244_v30  ;;  %v185_v29 = vld [vmem:[%s1229_s1 + $0x2d8] sm:$0xff]  ;;  %v411_v30 = vunpack.c.h.bf16 %v188_v22  ;;  %v402_v38 = vunpack.c.l.bf16 %v184_v28 }
  0xe7   :  { %648 = vmatprep.subr.mxu1 %v235_v33  ;;  %719 = vmatprep.subr.mxu0 %v237_v34  ;;  %v412_v33 = vunpack.c.l.bf16 %v189_v23  ;;  %v180_v34 = vld [vmem:[%s1229_s1 + $0x2b0] sm:$0xff]  ;;  %v405_v37 = vunpack.c.h.bf16 %v185_v29 }
  0xe8   :  { %649 = vmatpush1.msra.mxu1 %v234_v35  ;;  %720 = vmatpush1.msra.mxu0 %v236_v36  ;;  %v181_v35 = vld [vmem:[%s1229_s1 + $0x2b8] sm:$0xff]  ;;  %v403_v36 = vunpack.c.h.bf16 %v184_v28  ;;  %v394_v44 = vunpack.c.l.bf16 %v180_v34 }
  0xe9   :  { %650 = vmatprep.subr.mxu1 %v227_v39  ;;  %721 = vmatprep.subr.mxu0 %v229_v40  ;;  %v404_v39 = vunpack.c.l.bf16 %v185_v29  ;;  %v176_v40 = vld [vmem:[%s1229_s1 + $0x290] sm:$0xff]  ;;  %v397_v43 = vunpack.c.h.bf16 %v181_v35 }
  0xea   :  { %651 = vmatpush1.msra.mxu1 %v226_v41  ;;  %722 = vmatpush1.msra.mxu0 %v228_v42  ;;  %v177_v41 = vld [vmem:[%s1229_s1 + $0x298] sm:$0xff]  ;;  %v395_v42 = vunpack.c.h.bf16 %v180_v34  ;;  %v386_v50 = vunpack.c.l.bf16 %v176_v40 }
  0xeb   :  { %652 = vmatprep.subr.mxu1 %v475_v45  ;;  %723 = vmatprep.subr.mxu0 %v477_v46  ;;  %v396_v45 = vunpack.c.l.bf16 %v181_v35  ;;  %v172_v46 = vld [vmem:[%s1229_s1 + $0x270] sm:$0xff]  ;;  %v389_v49 = vunpack.c.h.bf16 %v177_v41 }
  0xec   :  { %653 = vmatpush2.msra.mxu1 %v474_v47  ;;  %724 = vmatpush2.msra.mxu0 %v476_v48  ;;  %v173_v47 = vld [vmem:[%s1229_s1 + $0x278] sm:$0xff]  ;;  %v387_v48 = vunpack.c.h.bf16 %v176_v40  ;;  %v378_v56 = vunpack.c.l.bf16 %v172_v46 }
  0xed   :  { %654 = vmatprep.subr.mxu1 %v467_v51  ;;  %725 = vmatprep.subr.mxu0 %v469_v52  ;;  %v388_v51 = vunpack.c.l.bf16 %v177_v41  ;;  %v168_v52 = vld [vmem:[%s1229_s1 + $0x250] sm:$0xff]  ;;  %v381_v55 = vunpack.c.h.bf16 %v173_v47 }
  0xee   :  { %655 = vmatpush2.msra.mxu1 %v466_v53  ;;  %726 = vmatpush2.msra.mxu0 %v468_v54  ;;  %v169_v53 = vld [vmem:[%s1229_s1 + $0x258] sm:$0xff]  ;;  %v379_v54 = vunpack.c.h.bf16 %v172_v46  ;;  %v370_v62 = vunpack.c.l.bf16 %v168_v52 }
  0xef   :  { %656 = vmatprep.subr.mxu1 %v459_v57  ;;  %727 = vmatprep.subr.mxu0 %v461_v58  ;;  %v380_v57 = vunpack.c.l.bf16 %v173_v47  ;;  %v164_v58 = vld [vmem:[%s1229_s1 + $0x230] sm:$0xff]  ;;  %v373_v61 = vunpack.c.h.bf16 %v169_v53 }
  0xf0   :  { %657 = vmatpush2.msra.mxu1 %v458_v59  ;;  %728 = vmatpush2.msra.mxu0 %v460_v60  ;;  %v165_v59 = vld [vmem:[%s1229_s1 + $0x238] sm:$0xff]  ;;  %v371_v60 = vunpack.c.h.bf16 %v168_v52  ;;  %v362_v4 = vunpack.c.l.bf16 %v164_v58 }
  0xf1   :  { %658 = vmatprep.subr.mxu1 %v451_v63  ;;  %729 = vmatprep.subr.mxu0 %v453_v0  ;;  %v372_v63 = vunpack.c.l.bf16 %v169_v53  ;;  %v160_v0 = vld [vmem:[%s1229_s1 + $0x210] sm:$0xff]  ;;  %v365_v3 = vunpack.c.h.bf16 %v165_v59 }
  0xf2   :  { %659 = vmatpush2.msra.mxu1 %v450_v1  ;;  %730 = vmatpush2.msra.mxu0 %v452_v2  ;;  %v161_v1 = vld [vmem:[%s1229_s1 + $0x218] sm:$0xff]  ;;  %v363_v2 = vunpack.c.h.bf16 %v164_v58 }
  0xf3   :  { %660 = vmatprep.subr.mxu1 %v443_v5  ;;  %731 = vmatprep.subr.mxu0 %v445_v6  ;;  %v364_v5 = vunpack.c.l.bf16 %v165_v59  ;;  %v355_v6 = vunpack.c.h.bf16 %v160_v0  ;;  %v356_v9 = vunpack.c.l.bf16 %v161_v1 }
  0xf4   :  { %661 = vmatpush2.msra.mxu1 %v442_v7  ;;  %732 = vmatpush2.msra.mxu0 %v444_v8  ;;  %v357_v7 = vunpack.c.h.bf16 %v161_v1  ;;  %v354_v8 = vunpack.c.l.bf16 %v160_v0 }
  0xf5   :  { %662 = vmatprep.subr.mxu1 %v435_v12  ;;  %733 = vmatprep.subr.mxu0 %v437_v13 }
  0xf6   :  { %663 = vmatpush2.msra.mxu1 %v434_v14  ;;  %734 = vmatpush2.msra.mxu0 %v436_v15 }
  0xf7   :  { %664 = vmatprep.subr.mxu1 %v427_v18  ;;  %735 = vmatprep.subr.mxu0 %v429_v19 }
  0xf8   :  { %665 = vmatpush2.msra.mxu1 %v426_v20  ;;  %736 = vmatpush2.msra.mxu0 %v428_v21 }
  0xf9   :  { %666 = vmatprep.subr.mxu1 %v419_v24  ;;  %737 = vmatprep.subr.mxu0 %v421_v25 }
  0xfa   :  { %667 = vmatpush2.msra.mxu1 %v418_v26  ;;  %738 = vmatpush2.msra.mxu0 %v420_v27 }
  0xfb   :  { %668 = vmatprep.subr.mxu1 %v411_v30  ;;  %739 = vmatprep.subr.mxu0 %v413_v31 }
  0xfc   :  { %669 = vmatpush2.msra.mxu1 %v410_v32  ;;  %740 = vmatpush2.msra.mxu0 %v412_v33 }
  0xfd   :  { %670 = vmatprep.subr.mxu1 %v403_v36  ;;  %741 = vmatprep.subr.mxu0 %v405_v37 }
  0xfe   :  { %671 = vmatpush2.msra.mxu1 %v402_v38  ;;  %742 = vmatpush2.msra.mxu0 %v404_v39 }
  0xff   :  { %672 = vmatprep.subr.mxu1 %v395_v42  ;;  %743 = vmatprep.subr.mxu0 %v397_v43 }
 0x100   :  { %673 = vmatpush2.msra.mxu1 %v394_v44  ;;  %744 = vmatpush2.msra.mxu0 %v396_v45 }
 0x101   :  { %674 = vmatprep.subr.mxu1 %v387_v48  ;;  %745 = vmatprep.subr.mxu0 %v389_v49 }
 0x102   :  { %675 = vmatpush2.msra.mxu1 %v386_v50  ;;  %746 = vmatpush2.msra.mxu0 %v388_v51 }
 0x103   :  { %676 = vmatprep.subr.mxu1 %v379_v54  ;;  %747 = vmatprep.subr.mxu0 %v381_v55 }
 0x104   :  { %677 = vmatpush2.msra.mxu1 %v378_v56  ;;  %748 = vmatpush2.msra.mxu0 %v380_v57 }
 0x105   :  { %678 = vmatprep.subr.mxu1 %v371_v60  ;;  %749 = vmatprep.subr.mxu0 %v373_v61 }
 0x106   :  { %679 = vmatpush2.msra.mxu1 %v370_v62  ;;  %750 = vmatpush2.msra.mxu0 %v372_v63 }
 0x107   :  { %680 = vmatprep.subr.mxu1 %v363_v2  ;;  %751 = vmatprep.subr.mxu0 %v365_v3 }
 0x108   :  { %681 = vmatpush2.msra.mxu1 %v362_v4  ;;  %752 = vmatpush2.msra.mxu0 %v364_v5 }
 0x109   :  { %682 = vmatprep.subr.mxu1 %v355_v6  ;;  %753 = vmatprep.subr.mxu0 %v357_v7 }
 0x10a   :  { %683 = vmatpush2.msra.mxu1 %v354_v8  ;;  %754 = vmatpush2.msra.mxu0 %v356_v9 }
 0x10b   :  { %685 = vmatmul.mubr.f32.vlgmr.msra.gmra.mxu1 %v1014_v11  ;;  %756 = vmatmul.mubr.f32.vlgmr.msra.gmra.mxu0 %v1014_v11 }
 0x18a   :  { %v544_v10 = vpop.f32.mrf.mxu1  ;;  %v615_v12 = vpop.f32.mrf.mxu0 }
 0x18b   :  { %762 = vst [vmem:[%s1230_s3] sm:$0xff] %v544_v10  ;;  %764 = vst [vmem:[%s1230_s3 + $0x10] sm:$0xff] %v615_v12 }
 0x18c   :  { %v546_v13 = vpop.f32.mrf.mxu1  ;;  %v617_v14 = vpop.f32.mrf.mxu0 }
 0x18d   :  { %763 = vst [vmem:[%s1230_s3 + $0x8] sm:$0xff] %v546_v13  ;;  %765 = vst [vmem:[%s1230_s3 + $0x18] sm:$0xff] %v617_v14 }
 0x1cb   :  { %v686_v11 = vpop.f32.mrf.mxu1  ;;  %v757_v15 = vpop.f32.mrf.mxu0 }
 0x1cc   :  { %766 = vst [vmem:[%s1230_s3 + $0x20] sm:$0xff] %v686_v11  ;;  %768 = vst [vmem:[%s1230_s3 + $0x30] sm:$0xff] %v757_v15 }
 0x1cd   :  { %v688_v16 = vpop.f32.mrf.mxu1  ;;  %v759_v17 = vpop.f32.mrf.mxu0 }
 0x1ce   :  { %767 = vst [vmem:[%s1230_s3 + $0x28] sm:$0xff] %v688_v16  ;;  %769 = vst [vmem:[%s1230_s3 + $0x38] sm:$0xff] %v759_v17 }

</bundles_post_ra>
